<compile_context>
chip_gen: v6e
topology: v6e:2x2x1
jax: 0.10.0
libtpu: 0.0.40
codegen_flags: <defaults>
</compile_context>

<pallas_src>
import functools

import jax
import jax.numpy as jnp
from jax.experimental import pallas as pl
from jax.experimental.pallas import tpu as pltpu

EPS = 2.220446049250313e-16  # np.finfo(float).eps, as in the PyTorch module


def _pick_lane_tile(width, n_rows, itemsize, target_bytes):
    """Largest multiple-of-128 lane count with rows*lanes*itemsize ~= target,
    clamped to the full width (a full-width block need not be 128-aligned)."""
    lanes = (target_bytes // max(1, n_rows * itemsize)) // 128 * 128
    lanes = max(128, int(lanes))
    return int(width) if lanes >= width else lanes


def _noise_target_bytes():
    # ~0.35 us per grid step -> >=1-2 MiB per block to sit near the HBM
    # roofline on v5e/v6e; v7x (3.2 TB/s HBM) amortizes better with bigger
    # tiles, still trivially inside the 32 MiB scoped VMEM budget.
    try:
        kind = jax.devices()[0].device_kind.lower()
    except Exception:
        kind = ""
    if "v7" in kind or "tpu7" in kind:
        return 4 * 1024 * 1024
    return 2 * 1024 * 1024


def _mle_gnhp_kernel(nthr_ref, tok_ref, act_ref, noise_ref, nout_ref, lout_ref,
                     *, tile_w, tile_l, steps_n, steps_a, n_nblk, n_ablk):
    p = pl.program_id(0)          # parallel slice (dual-TC on v7x)
    i = pl.program_id(1)          # sequential reduction step

    # Output blocks are resident across the inner axis (their index map depends
    # only on p) -> use them directly as accumulators.
    @pl.when(i == 0)
    def _init():
        nout_ref[...] = jnp.zeros_like(nout_ref)
        lout_ref[...] = jnp.zeros_like(lout_ref)

    # ---- Monte-Carlo integral: masked sum over this lane-dense noise tile.
    jn = p * steps_n + i
    @pl.when(jnp.logical_and(i < steps_n, jn < n_nblk))
    def _noise():
        x = noise_ref[...].astype(jnp.float32)                  # (rows, TW)
        col = jax.lax.broadcasted_iota(jnp.int32, x.shape, 1)
        thr = nthr_ref[...] - jn * tile_w                       # (rows, 1) i32
        # select (not multiply) so OOB/padding garbage in the last tile never
        # leaks into the sum.
        part = jnp.sum(jnp.where(col < thr, x, 0.0), axis=-1, keepdims=True)
        nout_ref[...] += part

    # ---- log-intensity term at the actual events (tiled over L as well).
    ja = p * steps_a + i
    @pl.when(jnp.logical_and(i < steps_a, ja < n_ablk))
    def _actual():
        a = act_ref[...].astype(jnp.float32)                    # (B, TL)
        col = jax.lax.broadcasted_iota(jnp.int32, a.shape, 1)
        thr = tok_ref[...] - ja * tile_l                        # (B, 1) i32
        la = jnp.where(col < thr, jnp.log(a + EPS), 0.0)
        lout_ref[...] += jnp.sum(la, axis=-1, keepdims=True)


def mle_gnhp_pallas(inten_actual, inten_noise, token_num, noise_count,
                    duration, inten_num_per):
    """MLE.mle_gnhp reduction. Returns (log_likelihood, inten_num) f32 scalars.

    inten_actual : [B, L] or [B, L, Kt]  intensities at the observed types
    inten_noise  : [B, N, K]             intensities of all K types at MC times
    token_num    : [B] int               # real tokens per sequence
    noise_count  : [B] int               # valid MC samples per sequence
    duration     : [B] float             sequence durations
    Masks are assumed to be prefix masks (first token_num / noise_count entries
    valid), as produced by GNHP.get_target / get_mc_samples. Inputs may be bf16
    (the kernel upcasts after the load and accumulates in f32).
    """
    if inten_actual.ndim == 3:
        if inten_actual.shape[-1] == 1:
            inten_actual = inten_actual[..., 0]      # free squeeze (Kt == 1)
        else:
            inten_actual = jnp.sum(inten_actual, axis=-1)
    B, L = inten_actual.shape
    _, N, K = inten_noise.shape
    NF = N * K

    # Sublane packing: view each row's flat [N*K] stream as R sub-rows so the
    # noise blocks fill vreg sublanes even at tiny batch sizes.
    if B % 8 == 0:
        R = 1
    else:
        R = next(r for r in (8, 4, 2, 1) if NF % r == 0)
    rows, NW = B * R, NF // R
    noise2 = inten_noise.reshape(rows, NW)           # free row-major view

    # Per-(sub)row prefix-mask thresholds, precomputed once as int32.
    thr_full = noise_count.astype(jnp.int32) * K                      # (B,)
    sub_off = jnp.arange(R, dtype=jnp.int32) * NW                     # (R,)
    nthr = jnp.minimum(thr_full[:, None] - sub_off[None, :], NW)
    nthr = nthr.reshape(rows, 1)                                      # (rows,1)
    tok = jnp.minimum(token_num.astype(jnp.int32), L)[:, None]        # (B, 1)

    # Byte-targeted lane tiles.
    tile_w = _pick_lane_tile(NW, rows, noise2.dtype.itemsize,
                             _noise_target_bytes())
    tile_l = _pick_lane_tile(L, B, inten_actual.dtype.itemsize,
                             2 * 1024 * 1024)
    n_nblk = pl.cdiv(NW, tile_w)
    n_ablk = pl.cdiv(L, tile_l)

    # Leading 'parallel' axis: splits the streaming reduction across the two
    # TensorCores on v7x; on 1-TC chips it is just a short outer loop.
    P = 2 if n_nblk >= 2 else 1
    steps_n = pl.cdiv(n_nblk, P)
    steps_a = pl.cdiv(n_ablk, P)
    steps = max(steps_n, steps_a)

    kernel = functools.partial(
        _mle_gnhp_kernel, tile_w=tile_w, tile_l=tile_l,
        steps_n=steps_n, steps_a=steps_a, n_nblk=n_nblk, n_ablk=n_ablk)

    def _noise_idx(p, i):
        return (0, jnp.minimum(p * steps_n + jnp.minimum(i, steps_n - 1),
                               n_nblk - 1))

    def _act_idx(p, i):
        return (0, jnp.minimum(p * steps_a + jnp.minimum(i, steps_a - 1),
                               n_ablk - 1))

    nout, lout = pl.pallas_call(
        kernel,
        out_shape=(jax.ShapeDtypeStruct((P, rows, 1), jnp.float32),
                   jax.ShapeDtypeStruct((P, B, 1), jnp.float32)),
        grid=(P, steps),
        in_specs=[
            pl.BlockSpec((rows, 1), lambda p, i: (0, 0)),   # noise thresholds
            pl.BlockSpec((B, 1), lambda p, i: (0, 0)),      # token thresholds
            pl.BlockSpec((B, tile_l), _act_idx),            # actual intensities
            # TODO(synk): pipeline_mode=pl.Buffered(3) here if a profile shows
            # exposed DMA behind the tiny per-step compute.
            pl.BlockSpec((rows, tile_w), _noise_idx),       # noise intensities
        ],
        out_specs=(pl.BlockSpec((None, rows, 1), lambda p, i: (p, 0, 0)),
                   pl.BlockSpec((None, B, 1), lambda p, i: (p, 0, 0))),
        compiler_params=pltpu.CompilerParams(
            dimension_semantics=("parallel", "arbitrary"),
            vmem_limit_bytes=32 * 1024 * 1024),
    )(nthr, tok, inten_actual, noise2)

    # Tiny scalar epilogue (pure JAX): per-row combine + global sums.
    noise_sum = nout.sum(axis=0)[:, 0].reshape(B, R).sum(axis=1)      # (B,)
    cnt = jnp.minimum(noise_count.astype(jnp.float32), float(N))
    dur = duration.astype(jnp.float32)
    # NOTE: jnp.maximum guards 0/0 when a row has zero valid MC samples; the
    # PyTorch reference would produce NaN in that degenerate case.
    integral = dur * noise_sum / jnp.maximum(cnt, 1.0)
    log_likelihood = lout.sum() - integral.sum()
    # inten_num is pure prefix-mask counting -> scalar math, no kernel needed.
    inten_num = (jnp.minimum(token_num.astype(jnp.float32), float(L)).sum()
                 + cnt.sum() * float(inten_num_per))
    return log_likelihood, inten_num


if __name__ == "__main__":
    # Small synthetic setup consistent with mle_gnhp's shapes.
    B = 2                 # batch
    K = 4                 # number of event types (model.get_inten_num() == K)
    seq_plus2 = 10        # T+2 (BOS + T events + EOS/pad)
    L = seq_plus2 - 1     # positions where intensities are evaluated
    mc_sample_num = 2

    key = jax.random.PRNGKey(0)
    k1, k2 = jax.random.split(key)

    token_num = jnp.array([7, 5], dtype=jnp.int32)           # tokens per seq
    duration = jnp.array([10.0, 8.0], dtype=jnp.float32)     # duration per seq
    noise_count = token_num * mc_sample_num                  # valid MC samples
    N = int(jnp.max(noise_count))                            # padded MC axis

    # GNHP intensity computation is external; synthesized here as deterministic
    # positive intensities via softplus of Gaussian draws.
    inten_actual = jax.nn.softplus(jax.random.normal(k1, (B, L, 1)))  # [B,L,1]
    inten_noise = jax.nn.softplus(jax.random.normal(k2, (B, N, K)))   # [B,N,K]

    ll, inten_num = mle_gnhp_pallas(inten_actual, inten_noise, token_num,
                                    noise_count, duration, inten_num_per=K)
    ll = jax.block_until_ready(ll)
    inten_num = jax.block_until_ready(inten_num)

    # Pure-JAX reference mirroring MLE.mle_gnhp reductions.
    pos = jnp.arange(L)[None, :]
    mask = (pos < token_num[:, None]).astype(jnp.float32)             # [B, L]
    npos = jnp.arange(N)[None, :]
    mask_noise = (npos < noise_count[:, None]).astype(jnp.float32)    # [B, N]
    log_inten = jnp.log(inten_actual.sum(-1) + EPS) * mask
    integral = (inten_noise.sum(-1) * mask_noise).sum(-1) / mask_noise.sum(-1)
    integral = duration * integral
    ll_ref = log_inten.sum() - integral.sum()
    num_ref = mask.sum() + mask_noise.sum() * K

    assert jnp.allclose(ll, ll_ref, rtol=1e-5, atol=1e-5), (ll, ll_ref)
    assert jnp.allclose(inten_num, num_ref, rtol=1e-6), (inten_num, num_ref)
    print("KERNEL_OK")
</pallas_src>

<mosaic_0001>
module attributes {stable_mosaic.version = 11 : i64} {
  func.func @_mle_gnhp_kernel(%arg0: i32, %arg1: i32, %arg2: memref<16x1xi32, #tpu.memory_space<vmem>>, %arg3: memref<2x1xi32, #tpu.memory_space<vmem>>, %arg4: memref<2x9xf32, #tpu.memory_space<vmem>>, %arg5: memref<16x7xf32, #tpu.memory_space<vmem>>, %arg6: memref<1x16x1xf32, #tpu.memory_space<vmem>>, %arg7: memref<1x2x1xf32, #tpu.memory_space<vmem>>) attributes {dimension_semantics = [#tpu.dimension_semantics<parallel>, #tpu.dimension_semantics<arbitrary>], iteration_bounds = array<i64: 1, 1>, scalar_prefetch = 0 : i64, scratch_operands = 0 : i64, tpu.core_type = #tpu.core_type<tc>, window_params = [{pipeline_mode = #tpu.pipeline_mode<synchronous>, transform_indices = @transform_0, window_bounds = array<i64: 16, 1>}, {pipeline_mode = #tpu.pipeline_mode<synchronous>, transform_indices = @transform_1, window_bounds = array<i64: 2, 1>}, {transform_indices = @transform_2, window_bounds = array<i64: 2, 9>}, {transform_indices = @transform_3, window_bounds = array<i64: 16, 7>}, {transform_indices = @transform_4, window_bounds = array<i64: 1, 16, 1>}, {transform_indices = @transform_5, window_bounds = array<i64: 1, 2, 1>}]} {
    %c0_i32 = arith.constant 0 : i32
    %0 = arith.cmpi eq, %arg1, %c0_i32 : i32
    %1 = arith.extui %0 : i1 to i32
    %c0_i32_0 = arith.constant 0 : i32
    %2 = arith.cmpi ne, %1, %c0_i32_0 : i32
    scf.if %2 {
      %cst = arith.constant 0.000000e+00 : f32
      %17 = vector.broadcast %cst : f32 to vector<16x1xf32>
      %c0 = arith.constant 0 : index
      %c0_8 = arith.constant 0 : index
      %c0_9 = arith.constant 0 : index
      %18 = vector.load %arg6[%c0, %c0_8, %c0_9] : memref<1x16x1xf32, #tpu.memory_space<vmem>>, vector<1x16x1xf32>
      %19 = vector.shape_cast %18 : vector<1x16x1xf32> to vector<16x1xf32>
      %20 = vector.shape_cast %17 : vector<16x1xf32> to vector<1x16x1xf32>
      tpu.vector_store %arg6[%c0, %c0_8, %c0_9], %20 {strides = array<i32>} : memref<1x16x1xf32, #tpu.memory_space<vmem>>, vector<1x16x1xf32>,
      %cst_10 = arith.constant 0.000000e+00 : f32
      %21 = vector.broadcast %cst_10 : f32 to vector<2x1xf32>
      %c0_11 = arith.constant 0 : index
      %c0_12 = arith.constant 0 : index
      %c0_13 = arith.constant 0 : index
      %22 = vector.load %arg7[%c0_11, %c0_12, %c0_13] : memref<1x2x1xf32, #tpu.memory_space<vmem>>, vector<1x2x1xf32>
      %23 = vector.shape_cast %22 : vector<1x2x1xf32> to vector<2x1xf32>
      %24 = vector.shape_cast %21 : vector<2x1xf32> to vector<1x2x1xf32>
      tpu.vector_store %arg7[%c0_11, %c0_12, %c0_13], %24 {strides = array<i32>} : memref<1x2x1xf32, #tpu.memory_space<vmem>>, vector<1x2x1xf32>,
    } else {
    }
    %c1_i32 = arith.constant 1 : i32
    %3 = arith.muli %arg0, %c1_i32 : i32
    %4 = arith.addi %3, %arg1 : i32
    %c1_i32_1 = arith.constant 1 : i32
    %5 = arith.cmpi slt, %arg1, %c1_i32_1 : i32
    %c1_i32_2 = arith.constant 1 : i32
    %6 = arith.cmpi slt, %4, %c1_i32_2 : i32
    %7 = arith.andi %5, %6 : i1
    %8 = arith.extui %7 : i1 to i32
    %c0_i32_3 = arith.constant 0 : i32
    %9 = arith.cmpi ne, %8, %c0_i32_3 : i32
    scf.if %9 {
      %c0 = arith.constant 0 : index
      %c0_8 = arith.constant 0 : index
      %17 = vector.load %arg5[%c0, %c0_8] : memref<16x7xf32, #tpu.memory_space<vmem>>, vector<16x7xf32>
      %18 = tpu.iota {dimensions = array<i32: 1>} : vector<16x7xi32>
      %c0_9 = arith.constant 0 : index
      %c0_10 = arith.constant 0 : index
      %19 = vector.load %arg2[%c0_9, %c0_10] : memref<16x1xi32, #tpu.memory_space<vmem>>, vector<16x1xi32>
      %c7_i32 = arith.constant 7 : i32
      %20 = arith.muli %4, %c7_i32 : i32
      %21 = vector.broadcast %20 : i32 to vector<16x1xi32>
      %22 = arith.subi %19, %21 : vector<16x1xi32>
      %23 = vector.broadcast %22 : vector<16x1xi32> to vector<16x7xi32>
      %24 = arith.cmpi slt, %18, %23 : vector<16x7xi32>
      %cst = arith.constant 0.000000e+00 : f32
      %25 = vector.broadcast %cst : f32 to vector<16x7xf32>
      %26 = arith.select %24, %17, %25 : vector<16x7xi1>, vector<16x7xf32>
      %cst_11 = arith.constant dense<0.000000e+00> : vector<16xf32>
      %27 = vector.multi_reduction <add>, %26, %cst_11 [1] : vector<16x7xf32> to vector<16xf32>
      %28 = vector.shape_cast %27 : vector<16xf32> to vector<16x1xf32>
      %c0_12 = arith.constant 0 : index
      %c0_13 = arith.constant 0 : index
      %c0_14 = arith.constant 0 : index
      %29 = vector.load %arg6[%c0_12, %c0_13, %c0_14] : memref<1x16x1xf32, #tpu.memory_space<vmem>>, vector<1x16x1xf32>
      %30 = vector.shape_cast %29 : vector<1x16x1xf32> to vector<16x1xf32>
      %31 = arith.addf %30, %28 : vector<16x1xf32>
      %c0_15 = arith.constant 0 : index
      %c0_16 = arith.constant 0 : index
      %c0_17 = arith.constant 0 : index
      %32 = vector.load %arg6[%c0_15, %c0_16, %c0_17] : memref<1x16x1xf32, #tpu.memory_space<vmem>>, vector<1x16x1xf32>
      %33 = vector.shape_cast %32 : vector<1x16x1xf32> to vector<16x1xf32>
      %34 = vector.shape_cast %31 : vector<16x1xf32> to vector<1x16x1xf32>
      tpu.vector_store %arg6[%c0_15, %c0_16, %c0_17], %34 {strides = array<i32>} : memref<1x16x1xf32, #tpu.memory_space<vmem>>, vector<1x16x1xf32>,
    } else {
    }
    %c1_i32_4 = arith.constant 1 : i32
    %10 = arith.muli %arg0, %c1_i32_4 : i32
    %11 = arith.addi %10, %arg1 : i32
    %c1_i32_5 = arith.constant 1 : i32
    %12 = arith.cmpi slt, %arg1, %c1_i32_5 : i32
    %c1_i32_6 = arith.constant 1 : i32
    %13 = arith.cmpi slt, %11, %c1_i32_6 : i32
    %14 = arith.andi %12, %13 : i1
    %15 = arith.extui %14 : i1 to i32
    %c0_i32_7 = arith.constant 0 : i32
    %16 = arith.cmpi ne, %15, %c0_i32_7 : i32
    scf.if %16 {
      %c0 = arith.constant 0 : index
      %c0_8 = arith.constant 0 : index
      %17 = vector.load %arg4[%c0, %c0_8] : memref<2x9xf32, #tpu.memory_space<vmem>>, vector<2x9xf32>
      %18 = tpu.iota {dimensions = array<i32: 1>} : vector<2x9xi32>
      %c0_9 = arith.constant 0 : index
      %c0_10 = arith.constant 0 : index
      %19 = vector.load %arg3[%c0_9, %c0_10] : memref<2x1xi32, #tpu.memory_space<vmem>>, vector<2x1xi32>
      %c9_i32 = arith.constant 9 : i32
      %20 = arith.muli %11, %c9_i32 : i32
      %21 = vector.broadcast %20 : i32 to vector<2x1xi32>
      %22 = arith.subi %19, %21 : vector<2x1xi32>
      %23 = vector.broadcast %22 : vector<2x1xi32> to vector<2x9xi32>
      %24 = arith.cmpi slt, %18, %23 : vector<2x9xi32>
      %cst = arith.constant 2.22044605E-16 : f32
      %25 = vector.broadcast %cst : f32 to vector<2x9xf32>
      %26 = arith.addf %17, %25 : vector<2x9xf32>
      %27 = math.log %26 : vector<2x9xf32>
      %cst_11 = arith.constant 0.000000e+00 : f32
      %28 = vector.broadcast %cst_11 : f32 to vector<2x9xf32>
      %29 = arith.select %24, %27, %28 : vector<2x9xi1>, vector<2x9xf32>
      %c0_12 = arith.constant 0 : index
      %c0_13 = arith.constant 0 : index
      %c0_14 = arith.constant 0 : index
      %30 = vector.load %arg7[%c0_12, %c0_13, %c0_14] : memref<1x2x1xf32, #tpu.memory_space<vmem>>, vector<1x2x1xf32>
      %31 = vector.shape_cast %30 : vector<1x2x1xf32> to vector<2x1xf32>
      %cst_15 = arith.constant dense<0.000000e+00> : vector<2xf32>
      %32 = vector.multi_reduction <add>, %29, %cst_15 [1] : vector<2x9xf32> to vector<2xf32>
      %33 = vector.shape_cast %32 : vector<2xf32> to vector<2x1xf32>
      %34 = arith.addf %31, %33 : vector<2x1xf32>
      %c0_16 = arith.constant 0 : index
      %c0_17 = arith.constant 0 : index
      %c0_18 = arith.constant 0 : index
      %35 = vector.load %arg7[%c0_16, %c0_17, %c0_18] : memref<1x2x1xf32, #tpu.memory_space<vmem>>, vector<1x2x1xf32>
      %36 = vector.shape_cast %35 : vector<1x2x1xf32> to vector<2x1xf32>
      %37 = vector.shape_cast %34 : vector<2x1xf32> to vector<1x2x1xf32>
      tpu.vector_store %arg7[%c0_16, %c0_17, %c0_18], %37 {strides = array<i32>} : memref<1x2x1xf32, #tpu.memory_space<vmem>>, vector<1x2x1xf32>,
    } else {
    }
    return
  }
  func.func @transform_0(%arg0: i32, %arg1: i32) -> (i32, i32) {
    %c0_i32 = arith.constant 0 : i32
    %c0_i32_0 = arith.constant 0 : i32
    %c0_i32_1 = arith.constant 0 : i32
    return %c0_i32, %c0_i32_0 : i32, i32
  }
  func.func @transform_1(%arg0: i32, %arg1: i32) -> (i32, i32) {
    %c0_i32 = arith.constant 0 : i32
    %c0_i32_0 = arith.constant 0 : i32
    %c0_i32_1 = arith.constant 0 : i32
    return %c0_i32, %c0_i32_0 : i32, i32
  }
  func.func @transform_2(%arg0: i32, %arg1: i32) -> (i32, i32) {
    %c1_i32 = arith.constant 1 : i32
    %0 = arith.muli %arg0, %c1_i32 : i32
    %c0_i32 = arith.constant 0 : i32
    %1 = arith.minsi %arg1, %c0_i32 : i32
    %2 = arith.addi %0, %1 : i32
    %c0_i32_0 = arith.constant 0 : i32
    %3 = arith.minsi %2, %c0_i32_0 : i32
    %c0_i32_1 = arith.constant 0 : i32
    %c0_i32_2 = arith.constant 0 : i32
    return %c0_i32_1, %3 : i32, i32
  }
  func.func @transform_3(%arg0: i32, %arg1: i32) -> (i32, i32) {
    %c1_i32 = arith.constant 1 : i32
    %0 = arith.muli %arg0, %c1_i32 : i32
    %c0_i32 = arith.constant 0 : i32
    %1 = arith.minsi %arg1, %c0_i32 : i32
    %2 = arith.addi %0, %1 : i32
    %c0_i32_0 = arith.constant 0 : i32
    %3 = arith.minsi %2, %c0_i32_0 : i32
    %c0_i32_1 = arith.constant 0 : i32
    %c0_i32_2 = arith.constant 0 : i32
    return %c0_i32_1, %3 : i32, i32
  }
  func.func @transform_4(%arg0: i32, %arg1: i32) -> (i32, i32, i32) {
    %c0_i32 = arith.constant 0 : i32
    %c0_i32_0 = arith.constant 0 : i32
    %c0_i32_1 = arith.constant 0 : i32
    return %arg0, %c0_i32, %c0_i32_0 : i32, i32, i32
  }
  func.func @transform_5(%arg0: i32, %arg1: i32) -> (i32, i32, i32) {
    %c0_i32 = arith.constant 0 : i32
    %c0_i32_0 = arith.constant 0 : i32
    %c0_i32_1 = arith.constant 0 : i32
    return %arg0, %c0_i32, %c0_i32_0 : i32, i32, i32
  }
}

</mosaic_0001>

<bundles_post_ra>
// kernel: tpu_custom_call.1
= control target key start
LH: loop header
LB: loop body
LE: loop exit
PB: predicated region body
PF: predicated region fallthrough
CT: control target
= control target key end

     0   :  { %v170_v0 = vmov 0   ;;  %vm77_vm0 = vcmask 7168   ;;  %v171_v4 = vmov 0.0   ;;  %v91_v7 = vlaneseq  ;;  %s251_s0 = inlined_call_operand.vmem [shape: s32[16,1], index: 0, kind: input, shape index: {}]   ;;  %s252_s1 = inlined_call_operand.vmem [shape: s32[2,1], index: 1, kind: input, shape index: {}]   ;;  %s253_s4 = inlined_call_operand.vmem [shape: f32[1,16,1], index: 4, kind: output, shape index: {0}]   ;;  %s254_s2 = inlined_call_operand.vmem [shape: f32[2,9], index: 2, kind: input, shape index: {}]   ;;  %s255_s3 = inlined_call_operand.vmem [shape: f32[16,7], index: 3, kind: input, shape index: {}]   ;;  %s256_s5 = inlined_call_operand.vmem [shape: f32[1,2,1], index: 5, kind: output, shape index: {1}]  }
   0x1   :  { %166 = vset.pattern.permute.xlu0 %v170_v0  ;;  %v93_v1 = vld [vmem:[%s251_s0] sm:$0xff]  ;;  %167 = vset.pattern.permute.xlu1 %v170_v0  ;;  %v94_v3 = vld [vmem:[%s251_s0 + $0x8] sm:$0xff]  ;;  %78 = vst.msk [vmem:[%s253_s4] sm:$0xff] %vm77_vm0, %v171_v4  ;;  %79 = vst.msk [vmem:[%s253_s4 + $0x8] sm:$0xff] %vm77_vm0, %v171_v4  ;;  %vm109_vm1 = vcmask 56320   ;;  %vm137_vm5 = vcmask 66560  }
   0x2   :  { %v124_v2 = vld [vmem:[%s252_s1] sm:$0x3]  ;;  %100 = vperm.xlu0 %166, %v93_v1   ;;  %v92_v8 = vand.u32 127, %v91_v7  ;;  %v90_v16 = vld [vmem:[%s255_s3 + $0x8] sm:$0xff]  ;;  %vm80_vm6 = vcmask 1024  }
   0x3   :  { %129 = vperm.xlu1 %167, %v124_v2   ;;  %v123_v5 = vld [vmem:[%s254_s2] sm:$0x3]  ;;  %81 = vst.msk [vmem:[%s256_s5] sm:$0x3] %vm80_vm6, %v171_v4 }
   0x4   :  { %v132_v6 = vadd.f32 2.220446e-16, %v123_v5  ;;  %v89_v10 = vld [vmem:[%s255_s3] sm:$0xff] }
   0x6   :  { %103 = vperm.xlu0 %166, %v94_v3   ;;  %168 = vlog2.f32 %v132_v6 }
   0x8   :  { %v116_v22 = vld [vmem:[%s253_s4] sm:$0xff]  ;;  %v117_v25 = vld [vmem:[%s253_s4 + $0x8] sm:$0xff] }
   0xa   :  { %v136_v28 = vld [vmem:[%s256_s5] sm:$0x3] }
  0x13   :  { %v169_v9 = vpop.eup %168 }
  0x14   :  { %v134_v14 = vmul.f32 0.6931472, %v169_v9 }
  0x7d   :  { %v101_v11 = vpop.permute.xlu0 %100 }
  0x7e   :  { %v130_v12 = vpop.permute.xlu1 %129  ;;  %vm105_vm2 = vcmp.lt.s32.totalorder %v92_v8, %v101_v11 }
  0x7f   :  { %v107_v13 = vsel %vm105_vm2, %v89_v10, 0.0  ;;  %vm131_vm3 = vcmp.lt.s32.totalorder %v92_v8, %v130_v12 }
  0x80   :  { %v110_v15 = vsel %vm109_vm1, %v107_v13, 0.0  ;;  %v135_v19 = vsel %vm131_vm3, %v134_v14, 0.0 }
  0x81   :  { %111 = vadd.xlane.f32.xlu1 %v110_v15  ;;  %v104_v17 = vpop.permute.xlu0 %103  ;;  %v138_v21 = vsel %vm137_vm5, %v135_v19, 0.0 }
  0x82   :  { %vm106_vm4 = vcmp.lt.s32.totalorder %v92_v8, %v104_v17 }
  0x83   :  { %v108_v18 = vsel %vm106_vm4, %v90_v16, 0.0 }
  0x84   :  { %v113_v20 = vsel %vm109_vm1, %v108_v18, 0.0 }
  0x85   :  { %114 = vadd.xlane.f32.xlu0 %v113_v20 }
  0x89   :  { %139 = vadd.xlane.f32.xlu0 %v138_v21 }
 0x10a   :  { %v112_v23 = vpop.xlane.xlu1 %111 }
 0x10b   :  { %v118_v24 = vadd.f32 %v116_v22, %v112_v23 }
 0x10d   :  { %121 = vst.msk [vmem:[%s253_s4] sm:$0xff] %vm77_vm0, %v118_v24 }
 0x10e   :  { %v115_v26 = vpop.xlane.xlu0 %114 }
 0x10f   :  { %v119_v27 = vadd.f32 %v117_v25, %v115_v26 }
 0x111   :  { %122 = vst.msk [vmem:[%s253_s4 + $0x8] sm:$0xff] %vm77_vm0, %v119_v27 }
 0x112   :  { %v140_v29 = vpop.xlane.xlu0 %139 }
 0x113   :  { %v141_v30 = vadd.f32 %v140_v29, %v136_v28 }
 0x115   :  { %143 = vst.msk [vmem:[%s256_s5] sm:$0x3] %vm80_vm6, %v141_v30 }

</bundles_post_ra>
